<compile_context>
chip_gen: v6e
topology: v6e:2x2x1
jax: 0.10.0
libtpu: 0.0.40
codegen_flags: <defaults>
</compile_context>

<pallas_src>
import functools

import jax
import jax.numpy as jnp
from jax import lax
from jax.experimental import pallas as pl
from jax.experimental.pallas import tpu as pltpu


def _round_up(x, m):
    return ((x + m - 1) // m) * m


# ---------------------------------------------------------------------------
# Fused kernel: dense + bias + residual + LayerNorm (weight VMEM-resident)
# ---------------------------------------------------------------------------
def _att_output_kernel(x_ref, w_ref, res_ref, pgb_ref, o_ref, *, eps):
    # Full-K matmul against the resident weight. Weight is in PyTorch
    # (out, in) layout, so contract x dim 1 with w dim 1 (trans_b matmul).
    acc = lax.dot_general(
        x_ref[...], w_ref[...],
        dimension_numbers=(((1,), (1,)), ((), ())),
        preferred_element_type=jnp.float32)              # MXU, f32 accum

    # dense output + bias, dropout == identity (eval), + residual.
    # pgb slab rows: 0 = bias, 1 = gamma, 2 = beta (already f32).
    y = acc + pgb_ref[0:1, :] + res_ref[...].astype(jnp.float32)

    # One-pass LayerNorm over the hidden dim (PyTorch semantics: biased
    # variance, eps inside the sqrt).
    inv_h = 1.0 / y.shape[-1]
    s1 = jnp.sum(y, axis=-1, keepdims=True)
    s2 = jnp.sum(y * y, axis=-1, keepdims=True)
    mean = s1 * inv_h
    var = jnp.maximum(s2 * inv_h - mean * mean, 0.0)
    inv = lax.rsqrt(var + eps)                           # EUP slot
    out = (y - mean) * inv * pgb_ref[1:2, :] + pgb_ref[2:3, :]
    o_ref[...] = out.astype(o_ref.dtype)


# ---------------------------------------------------------------------------
# Wrapper
# ---------------------------------------------------------------------------
def bert_att_output(params, hidden_states, input_tensor, *, eps=1e-12,
                    tm_pref=256, compute_dtype=jnp.bfloat16):
    """hidden_states / input_tensor: (..., H). Matches BertAttOutput.forward.

    compute_dtype: dtype for the matmul operands / residual stream
    (default bf16; accumulation and LayerNorm stay f32). Pass None to keep
    the input dtype end-to-end.
    """
    orig_shape = hidden_states.shape
    H = orig_shape[-1]
    x = hidden_states.reshape(-1, H)
    res = input_tensor.reshape(-1, H)
    M, K = x.shape                      # K == H

    # Weight stays in PyTorch (out, in) layout -> no wrapper-side transpose.
    w = params["w"]
    # bias / gamma / beta fused into one f32 slab: one DMA, no in-kernel casts.
    pgb = jnp.stack([params["b"], params["gamma"], params["beta"]],
                    axis=0).astype(jnp.float32)          # (3, H)

    if compute_dtype is not None:
        x = x.astype(compute_dtype)
        w = w.astype(compute_dtype)
        res = res.astype(compute_dtype)

    # Fixed row tile + masked remainder keeps VMEM bounded for any M.
    if M >= tm_pref:
        tm = tm_pref
    else:
        tm = _round_up(M, 16)           # tiny inputs: one sublane-aligned step
    grid = (pl.cdiv(M, tm),)

    out_itemsize = jnp.dtype(hidden_states.dtype).itemsize
    cost = pl.CostEstimate(
        flops=2 * M * K * H + 10 * M * H,
        transcendentals=M,
        bytes_accessed=(x.dtype.itemsize * M * K        # activations, once
                        + w.dtype.itemsize * H * K      # weight, once (resident)
                        + res.dtype.itemsize * M * H    # residual, once
                        + 4 * 3 * H                     # param slab
                        + out_itemsize * M * H),        # output, once
    )

    kernel = functools.partial(_att_output_kernel, eps=eps)
    out = pl.pallas_call(
        kernel,
        out_shape=jax.ShapeDtypeStruct((M, H), hidden_states.dtype),
        grid_spec=pltpu.PrefetchScalarGridSpec(
            num_scalar_prefetch=0,
            grid=grid,
            in_specs=[
                pl.BlockSpec((tm, K), lambda i: (i, 0)),   # x row block
                pl.BlockSpec((H, K), lambda i: (0, 0)),    # resident weight
                pl.BlockSpec((tm, K), lambda i: (i, 0)),   # residual row block
                pl.BlockSpec((3, H), lambda i: (0, 0)),    # bias/gamma/beta slab
            ],
            out_specs=pl.BlockSpec((tm, H), lambda i: (i, 0)),
        ),
        compiler_params=pltpu.CompilerParams(
            dimension_semantics=("parallel",),             # megacore on v7x
            vmem_limit_bytes=48 * 1024 * 1024),
        cost_estimate=cost,
    )(x, w, res, pgb)
    return out.reshape(orig_shape)


# ---------------------------------------------------------------------------
# Pure-JAX reference (for correctness check)
# ---------------------------------------------------------------------------
def bert_att_output_ref(params, hidden_states, input_tensor, *, eps=1e-12):
    y = hidden_states @ params["w"].T + params["b"]
    y = y + input_tensor
    mean = jnp.mean(y, axis=-1, keepdims=True)
    var = jnp.mean((y - mean) ** 2, axis=-1, keepdims=True)
    return (y - mean) / jnp.sqrt(var + eps) * params["gamma"] + params["beta"]


if __name__ == "__main__":
    # Small config consistent with the module: batch=2, seq=8, hidden=32.
    B, S, H = 2, 8, 32

    key = jax.random.PRNGKey(0)
    ks = jax.random.split(key, 6)
    init = lambda k, shape, s=0.05: jax.random.normal(k, shape, jnp.float32) * s

    params = {
        "w": init(ks[0], (H, H)),
        "b": init(ks[1], (H,)),
        "gamma": 1.0 + init(ks[2], (H,), 0.1),
        "beta": init(ks[3], (H,), 0.1),
    }

    hidden_states = jax.random.normal(ks[4], (B, S, H), jnp.float32)
    input_tensor = jax.random.normal(ks[5], (B, S, H), jnp.float32)

    ref = bert_att_output_ref(params, hidden_states, input_tensor)

    # Default path: bf16 matmul I/O, f32 accumulation + LayerNorm.
    out = jax.block_until_ready(
        bert_att_output(params, hidden_states, input_tensor))
    assert out.shape == (B, S, H)
    assert out.dtype == hidden_states.dtype
    assert jnp.allclose(out, ref, atol=5e-2, rtol=5e-2), "bf16 path mismatch"

    # Full-f32 path: strict check against the reference.
    out_f32 = jax.block_until_ready(
        bert_att_output(params, hidden_states, input_tensor,
                        compute_dtype=None))
    assert jnp.allclose(out_f32, ref, atol=1e-4, rtol=1e-4), "f32 path mismatch"

    print("KERNEL_OK")
</pallas_src>

<mosaic_0001>
module attributes {stable_mosaic.version = 11 : i64} {
  func.func @_att_output_kernel(%arg0: i32, %arg1: memref<16x32xbf16, #tpu.memory_space<vmem>>, %arg2: memref<32x32xbf16, #tpu.memory_space<vmem>>, %arg3: memref<16x32xbf16, #tpu.memory_space<vmem>>, %arg4: memref<3x32xf32, #tpu.memory_space<vmem>>, %arg5: memref<16x32xf32, #tpu.memory_space<vmem>>) attributes {dimension_semantics = [#tpu.dimension_semantics<parallel>], iteration_bounds = array<i64: 1>, scalar_prefetch = 0 : i64, scratch_operands = 0 : i64, tpu.core_type = #tpu.core_type<tc>, window_params = [{transform_indices = @transform_0, window_bounds = array<i64: 16, 32>}, {pipeline_mode = #tpu.pipeline_mode<synchronous>, transform_indices = @transform_1, window_bounds = array<i64: 32, 32>}, {transform_indices = @transform_2, window_bounds = array<i64: 16, 32>}, {pipeline_mode = #tpu.pipeline_mode<synchronous>, transform_indices = @transform_3, window_bounds = array<i64: 3, 32>}, {transform_indices = @transform_4, window_bounds = array<i64: 16, 32>}]} {
    %c0 = arith.constant 0 : index
    %c0_0 = arith.constant 0 : index
    %0 = vector.load %arg1[%c0, %c0_0] : memref<16x32xbf16, #tpu.memory_space<vmem>>, vector<16x32xbf16>
    %c0_1 = arith.constant 0 : index
    %c0_2 = arith.constant 0 : index
    %1 = vector.load %arg2[%c0_1, %c0_2] : memref<32x32xbf16, #tpu.memory_space<vmem>>, vector<32x32xbf16>
    %cst = arith.constant dense<0.000000e+00> : vector<16x32xf32>
    %2 = tpu.matmul %0, %1, %cst {dimension_numbers = #tpu.dot_dimension_numbers<[1], [1], [0], [0], [0, 0, 1, 0], [], []>} : vector<16x32xbf16>, vector<32x32xbf16>, vector<16x32xf32> -> vector<16x32xf32>
    %c0_3 = arith.constant 0 : index
    %c0_4 = arith.constant 0 : index
    %3 = vector.load %arg4[%c0_3, %c0_4] : memref<3x32xf32, #tpu.memory_space<vmem>>, vector<1x32xf32>
    %4 = vector.broadcast %3 : vector<1x32xf32> to vector<16x32xf32>
    %5 = arith.addf %2, %4 : vector<16x32xf32>
    %c0_5 = arith.constant 0 : index
    %c0_6 = arith.constant 0 : index
    %6 = vector.load %arg3[%c0_5, %c0_6] : memref<16x32xbf16, #tpu.memory_space<vmem>>, vector<16x32xbf16>
    %7 = arith.extf %6 : vector<16x32xbf16> to vector<16x32xf32>
    %8 = arith.addf %5, %7 : vector<16x32xf32>
    %cst_7 = arith.constant dense<0.000000e+00> : vector<16xf32>
    %9 = vector.multi_reduction <add>, %8, %cst_7 [1] : vector<16x32xf32> to vector<16xf32>
    %10 = vector.shape_cast %9 : vector<16xf32> to vector<16x1xf32>
    %11 = arith.mulf %8, %8 : vector<16x32xf32>
    %cst_8 = arith.constant dense<0.000000e+00> : vector<16xf32>
    %12 = vector.multi_reduction <add>, %11, %cst_8 [1] : vector<16x32xf32> to vector<16xf32>
    %13 = vector.shape_cast %12 : vector<16xf32> to vector<16x1xf32>
    %cst_9 = arith.constant 3.125000e-02 : f32
    %14 = vector.broadcast %cst_9 : f32 to vector<16x1xf32>
    %15 = arith.mulf %10, %14 : vector<16x1xf32>
    %cst_10 = arith.constant 3.125000e-02 : f32
    %16 = vector.broadcast %cst_10 : f32 to vector<16x1xf32>
    %17 = arith.mulf %13, %16 : vector<16x1xf32>
    %18 = arith.mulf %15, %15 : vector<16x1xf32>
    %19 = arith.subf %17, %18 : vector<16x1xf32>
    %cst_11 = arith.constant 0.000000e+00 : f32
    %20 = vector.broadcast %cst_11 : f32 to vector<16x1xf32>
    %21 = arith.maximumf %19, %20 : vector<16x1xf32>
    %cst_12 = arith.constant 9.99999996E-13 : f32
    %22 = vector.broadcast %cst_12 : f32 to vector<16x1xf32>
    %23 = arith.addf %21, %22 : vector<16x1xf32>
    %24 = math.rsqrt %23 : vector<16x1xf32>
    %25 = vector.broadcast %15 : vector<16x1xf32> to vector<16x32xf32>
    %26 = arith.subf %8, %25 : vector<16x32xf32>
    %27 = vector.broadcast %24 : vector<16x1xf32> to vector<16x32xf32>
    %28 = arith.mulf %26, %27 : vector<16x32xf32>
    %c1 = arith.constant 1 : index
    %c0_13 = arith.constant 0 : index
    %29 = vector.load %arg4[%c1, %c0_13] : memref<3x32xf32, #tpu.memory_space<vmem>>, vector<1x32xf32>
    %30 = vector.broadcast %29 : vector<1x32xf32> to vector<16x32xf32>
    %31 = arith.mulf %28, %30 : vector<16x32xf32>
    %c2 = arith.constant 2 : index
    %c0_14 = arith.constant 0 : index
    %32 = vector.load %arg4[%c2, %c0_14] : memref<3x32xf32, #tpu.memory_space<vmem>>, vector<1x32xf32>
    %33 = vector.broadcast %32 : vector<1x32xf32> to vector<16x32xf32>
    %34 = arith.addf %31, %33 : vector<16x32xf32>
    %c0_15 = arith.constant 0 : index
    %c0_16 = arith.constant 0 : index
    %35 = vector.load %arg5[%c0_15, %c0_16] : memref<16x32xf32, #tpu.memory_space<vmem>>, vector<16x32xf32>
    tpu.vector_store %arg5[%c0_15, %c0_16], %34 {strides = array<i32>} : memref<16x32xf32, #tpu.memory_space<vmem>>, vector<16x32xf32>,
    return
  }
  func.func @transform_0(%arg0: i32) -> (i32, i32) {
    %c0_i32 = arith.constant 0 : i32
    %c0_i32_0 = arith.constant 0 : i32
    return %arg0, %c0_i32 : i32, i32
  }
  func.func @transform_1(%arg0: i32) -> (i32, i32) {
    %c0_i32 = arith.constant 0 : i32
    %c0_i32_0 = arith.constant 0 : i32
    %c0_i32_1 = arith.constant 0 : i32
    return %c0_i32, %c0_i32_0 : i32, i32
  }
  func.func @transform_2(%arg0: i32) -> (i32, i32) {
    %c0_i32 = arith.constant 0 : i32
    %c0_i32_0 = arith.constant 0 : i32
    return %arg0, %c0_i32 : i32, i32
  }
  func.func @transform_3(%arg0: i32) -> (i32, i32) {
    %c0_i32 = arith.constant 0 : i32
    %c0_i32_0 = arith.constant 0 : i32
    %c0_i32_1 = arith.constant 0 : i32
    return %c0_i32, %c0_i32_0 : i32, i32
  }
  func.func @transform_4(%arg0: i32) -> (i32, i32) {
    %c0_i32 = arith.constant 0 : i32
    %c0_i32_0 = arith.constant 0 : i32
    return %arg0, %c0_i32 : i32, i32
  }
}

</mosaic_0001>

<bundles_post_ra>
// kernel: tpu_custom_call.1
= control target key start
LH: loop header
LB: loop body
LE: loop exit
PB: predicated region body
PF: predicated region fallthrough
CT: control target
= control target key end

     0   :  { %9 = vsyncpa [#allocation3], 0  ;;  %s399_s0 = inlined_call_operand.hbm [shape: bf16[16,32], index: 0, kind: input, shape index: {}]   ;;  %s400_s1 = inlined_call_operand.hbm [shape: bf16[32,32], index: 1, kind: input, shape index: {}]   ;;  %s401_s2 = inlined_call_operand.hbm [shape: bf16[16,32], index: 2, kind: input, shape index: {}]   ;;  %s402_s3 = inlined_call_operand.vmem [shape: f32[3,32], index: 3, kind: input, shape index: {}]   ;;  %s403_s4 = inlined_call_operand.hbm [shape: f32[16,32], index: 4, kind: output, shape index: {}]  }
   0x1   :  { %10 = vsyncpa [#allocation6], 0 }
   0x2   :  { %11 = vsyncpa [#allocation4], 0  ;;  %s334_s15 = smov [#allocation5]   ;;  %s335_s17 = smov [#allocation2]  }
   0x3   :  { %s29_s16 = sshll.u32 %s334_s15, 4  ;;  %s17_s18 = sshll.u32 %s335_s17, 4  ;;  %s30_s16 = int_to_ptr.vmem [resolvable:$true] %s29_s16  ;;  %s18_s18 = int_to_ptr.vmem [resolvable:$true] %s17_s18 }
   0x4   :  { %s256_s19 = scalar_lea.vmem %s30_s16, 256  ;;  %p261_p1 = scmp.lt.s32.totalorder %s30_s16, %s30_s16 }
   0x5   :  { %p257_p0 = scmp.ne.s32.totalorder %s30_s16, %s256_s19  ;;  %p262_p2 = scmp.lt.s32.totalorder %s256_s19, %s256_s19 }
   0x7   :  { %p263_p3 = por %p262_p2, %p261_p1 }
   0x9   :  { %p264_p4 = pnand %p263_p3, %p257_p0 }
   0xb   :  { %267 = shalt.err (!%p264_p4)
}
   0xc   :  { %s336_s20 = smov 64   ;;  %s337_s21 = smov 4  }
   0xd   :  { %35 = dma.hbm_to_vmem [thread:$0]  %s400_s1, 256, %s30_s16, [#allocation6], %s336_s20, %s336_s20, %s337_s21  }
   0xe   :  { %s276_s24 = scalar_lea.vmem %s18_s18, 128  ;;  %p281_p6 = scmp.lt.s32.totalorder %s18_s18, %s18_s18 }
   0xf   :  { %p277_p5 = scmp.ne.s32.totalorder %s18_s18, %s276_s24  ;;  %p282_p7 = scmp.lt.s32.totalorder %s276_s24, %s276_s24 }
  0x11   :  { %p283_p8 = por %p282_p7, %p281_p6 }
  0x13   :  { %p284_p9 = pnand %p283_p8, %p277_p5 }
  0x15   :  { %287 = shalt.err (!%p284_p9)
}
  0x16   :  { %23 = dma.hbm_to_vmem [thread:$0]  %s399_s0, 128, %s18_s18, [#allocation3], %s336_s20, %s336_s20, %s337_s21  }
  0x17   :  { %s338_s27 = smov [#allocation7]  }
  0x18   :  { %s41_s28 = sshll.u32 %s338_s27, 4  ;;  %s42_s28 = int_to_ptr.vmem [resolvable:$true] %s41_s28 }
  0x19   :  { %s296_s29 = scalar_lea.vmem %s42_s28, 128  ;;  %p301_p11 = scmp.lt.s32.totalorder %s42_s28, %s42_s28 }
  0x1a   :  { %p297_p10 = scmp.ne.s32.totalorder %s42_s28, %s296_s29  ;;  %p302_p12 = scmp.lt.s32.totalorder %s296_s29, %s296_s29 }
  0x1c   :  { %p303_p13 = por %p302_p12, %p301_p11 }
  0x1e   :  { %p304_p0 = pnand %p303_p13, %p297_p10 }
  0x20   :  { %307 = shalt.err (!%p304_p0)
}
  0x21   :  { %47 = dma.hbm_to_vmem [thread:$0]  %s401_s2, 128, %s42_s28, [#allocation6], %s336_s20, %s336_s20, %s337_s21  }
  0x22   :  { %328 = dma.done.wait [#allocation3], 128  }
  0x23   :  { %329 = vsyncadd [#allocation3], 4294967168 }
  0x24   :  { %330 = dma.done.wait [#allocation6], 384  }
  0x25   :  { %331 = vsyncadd [#allocation6], 4294966912  ;;  %v339_v0 = vmov 0.0   ;;  %vm340_vm0 = vmmov 0   ;;  %vm86_vm1 = vcmask 261120   ;;  %v241_v1 = vld [vmem:[#allocation5 + $0x8] sm:$0xff]  }
  0x26   :  { %223 = vmatprep.subr.bf16.mxu0 %v339_v0  ;;  %227 = vmatprep.mubr.msk.bf16.mxu0 %vm340_vm0, %v339_v0  ;;  %v94_v2 = vsel %vm86_vm1, %v241_v1, 0  ;;  %v242_v3 = vld [vmem:[#allocation5] sm:$0xff]   ;;  %v243_v5 = vld [vmem:[#allocation2] sm:$0xff]   ;;  %v217_v6 = vld [vmem:[#allocation7] sm:$0xff]   ;;  %s341_s9 = smov [#allocation8]  }
  0x27   :  { %224 = vmatpush3.bf16.xpose.msra.mxu0 %v94_v2  ;;  %v91_v4 = vsel %vm86_vm1, %v242_v3, 0  ;;  %v209_v7 = vld [vmem:[%s402_s3] ss:$0 sm:$0xff]  ;;  %v218_v8 = vunpack.c.l.bf16 %v217_v6  ;;  %v219_v13 = vunpack.c.h.bf16 %v217_v6  ;;  %v214_v42 = vld [vmem:[%s402_s3 + $0x1] ss:$0 sm:$0xff]  ;;  %s196_s10 = sshll.u32 %s341_s9, 4  ;;  %s197_s10 = int_to_ptr.vmem [resolvable:$true] %s196_s10 }
  0x28   :  { %225 = vmatprep.subr.bf16.mxu0 %v339_v0  ;;  %v215_v44 = vld [vmem:[%s402_s3 + $0x2] ss:$0 sm:$0xff]  ;;  %s308_s11 = scalar_lea.vmem %s197_s10, 256  ;;  %p313_p2 = scmp.lt.s32.totalorder %s197_s10, %s197_s10 }
  0x29   :  { %p309_p1 = scmp.ne.s32.totalorder %s197_s10, %s308_s11  ;;  %p314_p3 = scmp.lt.s32.totalorder %s308_s11, %s308_s11 }
  0x2b   :  { %p315_p4 = por %p314_p3, %p313_p2 }
  0x2d   :  { %p316_p5 = pnand %p315_p4, %p309_p1 }
  0x2f   :  { %226 = vmatpush3.bf16.xpose.msra.mxu0 %v91_v4 }
  0x36   :  { %228 = vmatmul.mubr.msk.bf16.vlgmr.msra.gmra.mxu0 %vm86_vm1, %v243_v5 }
  0xf6   :  { %v130_v9 = vpop.f32.mrf.mxu0 }
  0xf7   :  { %v131_v10 = vadd.f32 %v209_v7, %v130_v9 }
  0xf8   :  { %v229_v11 = vpop.f32.mrf.mxu0 }
  0xf9   :  { %v141_v12 = vadd.f32 %v218_v8, %v131_v10 }
  0xfa   :  { %v133_v14 = vpop.f32.mrf.mxu0 }
  0xfb   :  { %v134_v15 = vadd.f32 %v209_v7, %v133_v14  ;;  %v143_v16 = vsel %vm86_vm1, %v141_v12, 0.0  ;;  %v149_v17 = vmul.f32 %v141_v12, %v141_v12 }
  0xfc   :  { %144 = vadd.xlane.f32.xlu0 %v143_v16  ;;  %v230_v18 = vpop.f32.mrf.mxu0 }
  0xfd   :  { %v142_v19 = vadd.f32 %v219_v13, %v134_v15  ;;  %v151_v20 = vsel %vm86_vm1, %v149_v17, 0.0 }
  0xfe   :  { %152 = vadd.xlane.f32.xlu1 %v151_v20 }
  0xff   :  { %v146_v21 = vsel %vm86_vm1, %v142_v19, 0.0  ;;  %v150_v22 = vmul.f32 %v142_v19, %v142_v19 }
 0x100   :  { %147 = vadd.xlane.f32.xlu0 %v146_v21 }
 0x101   :  { %v154_v23 = vsel %vm86_vm1, %v150_v22, 0.0 }
 0x102   :  { %155 = vadd.xlane.f32.xlu1 %v154_v23 }
 0x185   :  { %v145_v24 = vpop.xlane.xlu0 %144 }
 0x186   :  { %v157_v25 = vmul.f32 0.03125, %v145_v24 }
 0x187   :  { %v153_v26 = vpop.xlane.xlu1 %152 }
 0x188   :  { %v161_v27 = vmul.f32 %v157_v25, %v157_v25  ;;  %v159_v28 = vmul.f32 0.03125, %v153_v26  ;;  %v171_v40 = vsub.f32 %v141_v12, %v157_v25 }
 0x189   :  { %v148_v29 = vpop.xlane.xlu0 %147 }
 0x18a   :  { %v163_v30 = vsub.f32 %v159_v28, %v161_v27  ;;  %v158_v31 = vmul.f32 0.03125, %v148_v29 }
 0x18b   :  { %v156_v32 = vpop.xlane.xlu1 %155 }
 0x18c   :  { %v165_v33 = vmax.f32 %v163_v30, 0.0  ;;  %v162_v34 = vmul.f32 %v158_v31, %v158_v31  ;;  %v160_v35 = vmul.f32 0.03125, %v156_v32  ;;  %v172_v45 = vsub.f32 %v142_v19, %v158_v31 }
 0x18e   :  { %v167_v36 = vadd.f32 1e-12, %v165_v33  ;;  %v164_v37 = vsub.f32 %v160_v35, %v162_v34 }
 0x190   :  { %244 = vrsqrt.f32 %v167_v36  ;;  %v166_v38 = vmax.f32 %v164_v37, 0.0 }
 0x192   :  { %v168_v39 = vadd.f32 1e-12, %v166_v38 }
 0x194   :  { %246 = vrsqrt.f32 %v168_v39 }
 0x19d   :  { %v245_v41 = vpop.eup %244 }
 0x19e   :  { %v173_v43 = vmul.f32 %v245_v41, %v171_v40 }
 0x1a0   :  { %v180_v46 = vmul.f32 %v214_v42, %v173_v43 }
 0x1a1   :  { %v247_v47 = vpop.eup %246 }
 0x1a2   :  { %v174_v48 = vmul.f32 %v247_v47, %v172_v45  ;;  %v187_v49 = vadd.f32 %v215_v44, %v180_v46 }
 0x1a4   :  { %v181_v50 = vmul.f32 %v214_v42, %v174_v48  ;;  %189 = vst.msk [vmem:[#allocation8] sm:$0xff] %vm86_vm1, %v187_v49 }
 0x1a6   :  { %v188_v51 = vadd.f32 %v215_v44, %v181_v50 }
 0x1a8   :  { %190 = vst.msk [vmem:[#allocation8 + $0x8] sm:$0xff] %vm86_vm1, %v188_v51 }
 0x1a9   :  { %319 = shalt.err (!%p316_p5)
}
 0x1aa   :  { %s342_s3 = smov 128   ;;  %s343_s12 = smov 8  }
 0x1ab   :  { %202 = dma.vmem_to_hbm [thread:$0]  %s197_s10, 256, %s403_s4, [#allocation4], %s342_s3, %s342_s3, %s343_s12  }
 0x1ac   :  { %332 = dma.done.wait [#allocation4], 256  }
 0x1ad   :  { %333 = vsyncadd [#allocation4], 4294967040 }
 0x1ae   :  { %206 = vsyncpa [#allocation3], 1 }
 0x1af   :  { %207 = vsyncpa [#allocation6], 1 }
 0x1b0   :  { %208 = vsyncpa [#allocation4], 1 }

</bundles_post_ra>
